<compile_context>
chip_gen: v6e
topology: v6e:2x2x1
jax: 0.10.0
libtpu: 0.0.40
codegen_flags: <defaults>
</compile_context>

<pallas_src>
import math

import jax
import jax.numpy as jnp
from jax.experimental import pallas as pl
from jax.experimental.pallas import tpu as pltpu


def _build_pe(d_model: int, max_len: int = 100) -> jnp.ndarray:
    """Deterministic sinusoidal table, identical to the PyTorch __init__ (f32)."""
    assert d_model % 2 == 0, "PositionalEncoding requires an even d_model"
    position = jnp.arange(0, max_len, dtype=jnp.float32)[:, None]           # (max_len, 1)
    div_term = jnp.exp(
        jnp.arange(0, d_model, 2, dtype=jnp.float32) * (-math.log(10000.0) / d_model)
    )                                                                        # (d_model/2,)
    pe = jnp.zeros((max_len, d_model), dtype=jnp.float32)
    pe = pe.at[:, 0::2].set(jnp.sin(position * div_term))
    pe = pe.at[:, 1::2].set(jnp.cos(position * div_term))
    # unsqueeze(0).transpose(0, 1)  ->  (max_len, 1, d_model)
    return pe[:, None, :]


def _pe_add_kernel(x_ref, pe_ref, o_ref):
    # x_ref: (tile_s, tile_b, D); pe_ref: (tile_s, 1, D) f32 -> broadcast over batch.
    # Accumulate in f32 for parity with the PyTorch f32 `pe` buffer, cast on store.
    o_ref[...] = (x_ref[...].astype(jnp.float32) + pe_ref[...]).astype(o_ref.dtype)


def _cdiv(a: int, b: int) -> int:
    return -(-a // b)


def _vmem_budget():
    """Generation-aware (scoped-VMEM limit, default target x-tile bytes)."""
    try:
        phys = int(getattr(pltpu.get_tpu_info(), "vmem_capacity_bytes",
                           64 * 1024 * 1024))
    except Exception:                                   # be conservative if unknown
        phys = 64 * 1024 * 1024
    if phys >= 128 * 1024 * 1024:                       # v5e / v6e: 128 MiB physical
        return 96 * 1024 * 1024, 8 * 1024 * 1024
    # v7x-class: 64 MiB physical per TensorCore
    return min(44 * 1024 * 1024, (phys * 3) // 4), 6 * 1024 * 1024


def positional_encoding_forward(
    x: jnp.ndarray,
    pe: jnp.ndarray,
    *,
    target_tile_bytes: int | None = None,     # None -> generation-aware default
    min_pallas_bytes: int = 256 * 1024,       # below this, XLA fused add wins
    force_pallas: bool = False,
) -> jnp.ndarray:
    """x: (seq_len, batch, d_model); pe: (max_len, 1, d_model) f32 table."""
    seq_len, batch, d_model = x.shape
    max_len = pe.shape[0]
    assert seq_len <= max_len, (
        f"seq_len ({seq_len}) exceeds positional-encoding max_len ({max_len})"
    )

    pe = pe.astype(jnp.float32)               # keep the buffer f32 (PyTorch parity)
    itemsize = jnp.dtype(x.dtype).itemsize
    total_bytes = x.size * itemsize
    sublane = max(8, 32 // itemsize)          # 8 (f32) / 16 (bf16) / 32 (int8)

    # Dispatch guards: tiny inputs, lane-sparse d_model, or sublane-sparse batch
    # pay more in padding + launch overhead than the fused XLA add.
    lane_dense = (d_model % 128 == 0)
    use_pallas = force_pallas or (
        total_bytes >= min_pallas_bytes and lane_dense and batch >= sublane
    )
    if not use_pallas:
        return (x.astype(jnp.float32) + pe[:seq_len]).astype(x.dtype)

    vmem_limit, default_tile = _vmem_budget()
    if target_tile_bytes is None:
        target_tile_bytes = default_tile

    # --- tile sizing -------------------------------------------------------
    row_bytes = batch * d_model * itemsize
    if row_bytes <= target_tile_bytes:
        tile_b = batch
        tile_s = int(max(1, min(seq_len, target_tile_bytes // max(row_bytes, 1))))
    else:
        # Huge B*D rows (e.g. batch 512 x d_model 4096 f32): tile over batch too,
        # sublane-aligned, so the double-buffered working set stays inside VMEM.
        tile_s = 1
        tile_b = (target_tile_bytes // (d_model * itemsize)) // sublane * sublane
        tile_b = int(max(sublane, min(batch, tile_b)))

    # Working set per step: 2x(x) + 2x(out) + 2x(pe, sublane-padded f32 block).
    def _working_set(ts: int, tb: int) -> int:
        return 4 * ts * tb * d_model * itemsize + 2 * ts * 8 * d_model * 4

    while tile_s > 1 and _working_set(tile_s, tile_b) > (vmem_limit * 9) // 10:
        tile_s = max(1, tile_s // 2)

    n_s, n_b = _cdiv(seq_len, tile_s), _cdiv(batch, tile_b)
    # v7x megacore: guarantee >= 2 grid steps so both TensorCores get work,
    # and prefer an even seq-tile count for balanced split.
    if n_s * n_b < 2 and seq_len >= 2:
        tile_s = _cdiv(seq_len, 2)
        n_s = _cdiv(seq_len, tile_s)
    if n_b == 1 and n_s > 1 and n_s % 2 == 1:
        tile_s = _cdiv(seq_len, n_s + 1)
        n_s = _cdiv(seq_len, tile_s)
    grid = (n_s, n_b)

    # --- pallas call -------------------------------------------------------
    return pl.pallas_call(
        _pe_add_kernel,
        out_shape=jax.ShapeDtypeStruct((seq_len, batch, d_model), x.dtype),
        grid_spec=pltpu.PrefetchScalarGridSpec(
            num_scalar_prefetch=0,
            grid=grid,
            in_specs=[
                # x tile: last two block dims are sublane/lane-dense or full dims.
                pl.BlockSpec((tile_s, tile_b, d_model), lambda i, j: (i, j, 0)),
                # Full pe buffer passed; index_map selects the seq tile (no HBM
                # copy of pe[:seq_len]); size-1 batch dim broadcasts in-kernel.
                pl.BlockSpec((tile_s, 1, d_model), lambda i, j: (i, 0, 0)),
            ],
            out_specs=pl.BlockSpec((tile_s, tile_b, d_model), lambda i, j: (i, j, 0)),
        ),
        # x and output share shape/dtype; write the sum back over x's buffer.
        input_output_aliases={0: 0},
        compiler_params=pltpu.CompilerParams(
            dimension_semantics=("parallel", "parallel"),
            vmem_limit_bytes=vmem_limit,
        ),
        cost_estimate=pl.CostEstimate(
            flops=seq_len * batch * d_model,
            transcendentals=0,
            bytes_accessed=2 * total_bytes + seq_len * d_model * 4,
        ),
    )(x, pe)


if __name__ == "__main__":
    max_len = 100
    key = jax.random.PRNGKey(0)

    # Case 1: module-sized toy shapes (seq=8, batch=2, d_model=32) -> XLA fallback
    # (tiny, lane-sparse, sublane-sparse).
    s1, b1, d1 = 8, 2, 32
    pe1 = _build_pe(d1, max_len)
    x1 = jax.random.normal(key, (s1, b1, d1), dtype=jnp.float32)
    ref1 = x1 + pe1[:s1]
    out1 = jax.block_until_ready(positional_encoding_forward(x1, pe1))
    assert out1.shape == (s1, b1, d1)
    assert jnp.allclose(out1, ref1, atol=1e-6), "case 1 mismatch vs reference"

    # Case 2: force the Pallas path with a lane-dense (d_model=128), sublane-dense
    # (batch=8) block, several seq tiles and a partial last tile (14 = 3*4 + 2).
    s2, b2, d2 = 14, 8, 128
    pe2 = _build_pe(d2, max_len)
    x2 = jax.random.normal(jax.random.fold_in(key, 1), (s2, b2, d2), dtype=jnp.float32)
    ref2 = x2 + pe2[:s2]
    out2 = jax.block_until_ready(
        positional_encoding_forward(
            x2, pe2, force_pallas=True,
            target_tile_bytes=4 * b2 * d2 * 4,   # -> tile_s = 4, grid = (4, 1)
        )
    )
    assert jnp.allclose(out2, ref2, atol=1e-6), "case 2 mismatch vs reference"

    # Case 3: same shape, default generation-aware tiling (exercises the
    # grid>=2 / even-grid adjustment: one big tile is split into two).
    out2b = jax.block_until_ready(
        positional_encoding_forward(x2, pe2, force_pallas=True)
    )
    assert jnp.allclose(out2b, ref2, atol=1e-6), "case 3 mismatch vs reference"

    # Case 4: bf16 input -> f32 accumulation in-kernel, bf16 store.
    x3 = x2.astype(jnp.bfloat16)
    ref3 = (x3.astype(jnp.float32) + pe2[:s2]).astype(jnp.bfloat16)
    out3 = jax.block_until_ready(
        positional_encoding_forward(
            x3, pe2, force_pallas=True,
            target_tile_bytes=4 * b2 * d2 * 2,
        )
    )
    assert out3.dtype == jnp.bfloat16
    assert jnp.allclose(out3.astype(jnp.float32), ref3.astype(jnp.float32), atol=1e-2), \
        "case 4 (bf16) mismatch vs reference"

    print("KERNEL_OK")
</pallas_src>

<mosaic_0001>
module attributes {stable_mosaic.version = 11 : i64} {
  func.func @_pe_add_kernel(%arg0: i32, %arg1: i32, %arg2: memref<4x8x128xf32, #tpu.memory_space<vmem>>, %arg3: memref<4x1x128xf32, #tpu.memory_space<vmem>>, %arg4: memref<4x8x128xf32, #tpu.memory_space<vmem>>) attributes {dimension_semantics = [#tpu.dimension_semantics<parallel>, #tpu.dimension_semantics<parallel>], iteration_bounds = array<i64: 4, 1>, scalar_prefetch = 0 : i64, scratch_operands = 0 : i64, tpu.core_type = #tpu.core_type<tc>, window_params = [{transform_indices = @transform_0, window_bounds = array<i64: 4, 8, 128>}, {transform_indices = @transform_1, window_bounds = array<i64: 4, 1, 128>}, {transform_indices = @transform_2, window_bounds = array<i64: 4, 8, 128>}]} {
    %c0 = arith.constant 0 : index
    %c0_0 = arith.constant 0 : index
    %c0_1 = arith.constant 0 : index
    %0 = vector.load %arg2[%c0, %c0_0, %c0_1] : memref<4x8x128xf32, #tpu.memory_space<vmem>>, vector<4x8x128xf32>
    %c0_2 = arith.constant 0 : index
    %c0_3 = arith.constant 0 : index
    %c0_4 = arith.constant 0 : index
    %1 = vector.load %arg3[%c0_2, %c0_3, %c0_4] : memref<4x1x128xf32, #tpu.memory_space<vmem>>, vector<4x1x128xf32>
    %2 = vector.broadcast %1 : vector<4x1x128xf32> to vector<4x8x128xf32>
    %3 = arith.addf %0, %2 : vector<4x8x128xf32>
    %c0_5 = arith.constant 0 : index
    %c0_6 = arith.constant 0 : index
    %c0_7 = arith.constant 0 : index
    %4 = vector.load %arg4[%c0_5, %c0_6, %c0_7] : memref<4x8x128xf32, #tpu.memory_space<vmem>>, vector<4x8x128xf32>
    tpu.vector_store %arg4[%c0_5, %c0_6, %c0_7], %3 {strides = array<i32>} : memref<4x8x128xf32, #tpu.memory_space<vmem>>, vector<4x8x128xf32>,
    return
  }
  func.func @transform_0(%arg0: i32, %arg1: i32) -> (i32, i32, i32) {
    %c0_i32 = arith.constant 0 : i32
    %c0_i32_0 = arith.constant 0 : i32
    return %arg0, %arg1, %c0_i32 : i32, i32, i32
  }
  func.func @transform_1(%arg0: i32, %arg1: i32) -> (i32, i32, i32) {
    %c0_i32 = arith.constant 0 : i32
    %c0_i32_0 = arith.constant 0 : i32
    %c0_i32_1 = arith.constant 0 : i32
    return %arg0, %c0_i32, %c0_i32_0 : i32, i32, i32
  }
  func.func @transform_2(%arg0: i32, %arg1: i32) -> (i32, i32, i32) {
    %c0_i32 = arith.constant 0 : i32
    %c0_i32_0 = arith.constant 0 : i32
    return %arg0, %arg1, %c0_i32 : i32, i32, i32
  }
}

</mosaic_0001>

<bundles_post_ra>
// kernel: tpu_custom_call.1
= control target key start
LH: loop header
LB: loop body
LE: loop exit
PB: predicated region body
PF: predicated region fallthrough
CT: control target
= control target key end

     0   :  { %7 = vsyncpa [#allocation3], 0  ;;  %s762_s0 = inlined_call_operand.hbm [shape: f32[14,8,128], index: 0, kind: input, shape index: {}, may-alias: {0,2}]   ;;  %s763_s1 = inlined_call_operand.vmem [shape: f32[100,1,128], index: 1, kind: input, shape index: {}]   ;;  %s764_s2 = inlined_call_operand.hbm [shape: f32[14,8,128], index: 2, kind: output, shape index: {}, may-alias: {0,2}]  }
   0x1   :  { %9 = vsyncpa [#allocation3 + $0x1], 0 }
   0x2   :  { %10 = vsyncpa [#allocation4], 0 }
   0x3   :  { %12 = vsyncpa [#allocation4 + $0x1], 0  ;;  %s587_s9 = smov 0   ;;  %s589_s10 = smov 0  }
   0x4   :  { %s591_s11 = smov 0   ;;  %s593_s12 = smov 0  }
   0x5   :  { %s595_s13 = smov 0   ;;  %s597_s14 = smov 0  }
   0x6 LB: > { %s369_s15 = sadd.s32 4294967295, %s564_s14   ;;  %s370_s16 = sadd.s32 4294967294, %s564_s14   ;;  %s564_s14 = sphi %s597_s14, %s18_s14   ;;  %s560_s13 = sphi %s595_s13, %s772_s13   ;;  %s556_s12 = sphi %s593_s12, %s771_s12   ;;  %s552_s11 = sphi %s591_s11, %s770_s11   ;;  %s548_s10 = sphi %s589_s10, %s769_s10   ;;  %s544_s9 = sphi %s587_s9, %s768_s9  }
   0x7   : > { %s30_s17 = sadd.s32 1, %s560_s13  ;;  %s39_s18 = sadd.s32 1, %s552_s11 }
   0x8   : > { %p32_p0 = scmp.ge.s32.totalorder %s30_s17, 4  ;;  %p46_p1 = scmp.ne.s32.totalorder %s552_s11, %s548_s10 }
   0x9   : > { %p47_p2 = scmp.eq.s32.totalorder %s564_s14, 0  ;;  %p52_p3 = scmp.ne.s32.totalorder %s548_s10, %s544_s9 }
   0xa   : > { %s774_s17 = smov (%p32_p0, %s30_s17), 0  ;;  %p53_p5 = scmp.eq.s32.totalorder %s369_s15, 0 }
   0xb   : > { %p48_p4 = por %p47_p2, %p46_p1  ;;  %s34_s19 = ssub.s32 %s560_s13, %s774_s17 }
   0xc   : > { %p104_p6 = scmp.eq.s32.totalorder %s369_s15, 3  ;;  %p37_p7 = scmp.eq.s32.totalorder %s34_s19, 0 }
   0xd   : > { %p630_p8 = por %p53_p5, %p52_p3  ;;  %p110_p10 = scmp.eq.s32.totalorder %s370_s16, 3 }
   0xe   : > { %p634_p9 = por %p104_p6, %p46_p1  ;;  %p372_p12 = scmp.ge.s32.totalorder %s564_s14, 4 }
   0xf   : > { %s639_s22 = scalar_select %p37_p7, %s552_s11, %s39_s18  }
  0x10   : > { %p641_p11 = por %p110_p10, %p52_p3  ;;  %126 = sbr.rel (%p372_p12) target bundleno = 53 (0x35), region = 16 }
  0x15   : > { %129 = sbr.rel (!%p48_p4) target bundleno = 53 (0x35), region = 20  ;;  %s130_s24 = sand.u32 (%p48_p4), 1, %s552_s11  }
  0x16   : > { %s374_s25 = sshll.u32 (%p48_p4), %s560_s13, 2  ;;  %s373_s26 = sshll.u32 (%p48_p4), %s130_s24, 5 }
  0x17   : > { %s136_s27 = ssub.s32 (%p48_p4), 14, %s374_s25  ;;  %s651_s30 = scalar_lea.sflag (%p48_p4), [#allocation3], %s130_s24 }
  0x18   : > { %p137_p13 = scmp.lt.s32.totalorder (%p48_p4), %s136_s27, 4  ;;  %s134_s3 = scalar_lea.vmem (%p48_p4), [#allocation2], %s373_s26 }
  0x1a   : > { %s776_s27 = smov (!%p137_p13, %s136_s27), 4 }
  0x1b   : > { %s648_s28 = sshll.u32 %s776_s27, 7 }
  0x1c   : > { %s141_s29 = ssub.s32 512, %s648_s28 }
  0x1d   : > { %142 = vsyncadd %s651_s30, %s141_s29  ;;  %p376_p0 = scmp.ne.s32.totalorder %s648_s28, 0  ;;  %s397_s4 = sshll.u32 %s560_s13, 9 }
  0x1e   : > { %s659_s7 = scalar_lea.hbm %s762_s0, %s397_s4  ;;  %s148_s8 = sshll.u32 %s134_s3, 4  ;;  %s661_s8 = int_to_ptr.vmem [resolvable:$true] %s148_s8 }
  0x1f   : > { %s458_s15 = scalar_lea.hbm %s659_s7, %s648_s28  ;;  %s462_s19 = scalar_lea.hbm %s762_s0, 1792 }
  0x20   : > { %p459_p1 = scmp.ne.s32.totalorder %s659_s7, %s458_s15  ;;  %p464_p4 = scmp.lt.s32.totalorder %s462_s19, %s458_s15 }
  0x22   : > { %p460_p2 = pnand %p459_p1, %p376_p0 }
  0x24   : > { %p461_p3 = pneg %p460_p2 }
  0x26   : > { %p466_p5 = pnand %p464_p4, %p461_p3 }
  0x28   : > { %469 = shalt.err (!%p466_p5)
}
  0x29   : > { %s470_s24 = scalar_lea.vmem %s661_s8, %s648_s28  ;;  %s566_s25 = smov [#allocation2]  }
  0x2a   : > { %p471_p6 = scmp.ne.s32.totalorder %s661_s8, %s470_s24  ;;  %s474_s26 = sshll.u32 %s566_s25, 4  ;;  %s475_s26 = int_to_ptr.vmem [resolvable:$false] %s474_s26 }
  0x2b   : > { %s476_s27 = scalar_lea.vmem %s475_s26, 1024  ;;  %p477_p12 = scmp.lt.s32.totalorder %s661_s8, %s475_s26 }
  0x2c   : > { %p472_p7 = pnand %p471_p6, %p376_p0  ;;  %p478_p13 = scmp.lt.s32.totalorder %s476_s27, %s470_s24 }
  0x2e   : > { %p473_p10 = pneg %p472_p7  ;;  %p479_p1 = por %p478_p13, %p477_p12 }
  0x30   : > { %p480_p2 = pnand %p479_p1, %p473_p10 }
  0x32   : > { %483 = shalt.err (!%p480_p2)
}
  0x33   : > { %s567_s29 = smov 128   ;;  %s568_s3 = smov 8  }
  0x34   : > { %154 = dma.hbm_to_vmem [thread:$0]  (%p376_p0), %s659_s7, %s648_s28, %s661_s8, %s651_s30, %s567_s29, %s567_s29, %s568_s3  }
  0x35 PF: > { %p380_p3 = scmp.ge.s32.totalorder %s564_s14, 1  ;;  %p164_p4 = scmp.lt.s32.totalorder %s564_s14, 5 }
  0x37   : > { %p165_p5 = pnand %p380_p3, %p164_p4 }
  0x38   : > { %s686_s4 = sand.u32 (!%p165_p5), 1, %s548_s10  }
  0x39   : > { %168 = sbr.rel (%p165_p5) target bundleno = 102 (0x66), region = 28  ;;  %s381_s5 = sshll.u32 (!%p165_p5), %s686_s4, 5 }
  0x3a   : > { %s171_s6 = scalar_lea.sflag (!%p165_p5), [#allocation3], %s686_s4  ;;  %s174_s15 = scalar_lea.vmem (!%p165_p5), [#allocation2], %s381_s5 }
  0x3e   : > { %535 = dma.done.wait (%p630_p8), %s171_s6, 512  }
  0x3f   : > { %537 = vsyncadd (%p630_p8), %s171_s6, 4294966784  ;;  %s383_s28 = sshll.u32 %s556_s12, 2  ;;  %v214_v0 = vld [vmem:[%s174_s15] sm:$0xff]  ;;  %v215_v2 = vld [vmem:[%s174_s15 + $0x8] sm:$0xff]  ;;  %s198_s20 = scalar_lea.vmem [#allocation5], %s381_s5 }
  0x40   : > { %p205_p0 = scmp.lt.s32.totalorder %s383_s28, 99  ;;  %v216_v5 = vld [vmem:[%s174_s15 + $0x10] sm:$0xff]  ;;  %v217_v9 = vld [vmem:[%s174_s15 + $0x18] sm:$0xff]  ;;  %s255_s18 = scalar_lea.sflag [#allocation4], %s686_s4 }
  0x41   : > { %s263_s19 = ssub.s32 (%p634_p9), 14, %s383_s28 }
  0x42   : > { %s206_s30 = scalar_select %p205_p0, %s383_s28, 99 }
  0x43   : > { %p264_p8 = scmp.lt.s32.totalorder (%p634_p9), %s263_s19, 4 }
  0x44   : > { %s207_s16 = scalar_lea.vmem %s763_s1, %s206_s30 }
  0x45   : > { %v384_v1 = vld [vmem:[%s207_s16] ss:$0 sm:$0xff]  ;;  %v385_v4 = vld [vmem:[%s207_s16 + $0x1] ss:$0 sm:$0xff]  ;;  %v386_v6 = vld [vmem:[%s207_s16 + $0x2] ss:$0 sm:$0xff] }
  0x46   : > { %v246_v3 = vadd.f32 %v384_v1, %v214_v0  ;;  %v247_v7 = vadd.f32 %v385_v4, %v215_v2  ;;  %v248_v8 = vadd.f32 %v386_v6, %v216_v5  ;;  %v387_v10 = vld [vmem:[%s207_s16 + $0x3] ss:$0 sm:$0xff]  ;;  %261 = sbr.rel (!%p634_p9) target bundleno = 102 (0x66), region = 36 }
  0x47   : > { %v249_v11 = vadd.f32 %v387_v10, %v217_v9 }
  0x48   : > { %250 = vst [vmem:[%s198_s20] sm:$0xff] %v246_v3  ;;  %251 = vst [vmem:[%s198_s20 + $0x8] sm:$0xff] %v247_v7 }
  0x49   : > { %252 = vst [vmem:[%s198_s20 + $0x10] sm:$0xff] %v248_v8  ;;  %253 = vst [vmem:[%s198_s20 + $0x18] sm:$0xff] %v249_v11 }
  0x4b   : > { %s778_s19 = smov (!%p264_p8, %s263_s19), 4 }
  0x4c   : > { %s701_s24 = sshll.u32 %s778_s19, 7 }
  0x4d   : > { %s268_s25 = ssub.s32 512, %s701_s24 }
  0x4e   : > { %269 = vsyncadd %s255_s18, %s268_s25  ;;  %p391_p6 = scmp.ne.s32.totalorder %s701_s24, 0  ;;  %s398_s26 = sshll.u32 %s556_s12, 9 }
  0x4f   : > { %s711_s21 = scalar_lea.hbm %s764_s2, %s398_s26  ;;  %s275_s3 = sshll.u32 %s198_s20, 4  ;;  %s713_s3 = int_to_ptr.vmem [resolvable:$true] %s275_s3 }
  0x50   : > { %s484_s5 = scalar_lea.vmem %s713_s3, %s701_s24  ;;  %s569_s6 = smov [#allocation5]  }
  0x51   : > { %p485_p9 = scmp.ne.s32.totalorder %s713_s3, %s484_s5  ;;  %s488_s15 = sshll.u32 %s569_s6, 4  ;;  %s489_s15 = int_to_ptr.vmem [resolvable:$false] %s488_s15 }
  0x52   : > { %s490_s12 = scalar_lea.vmem %s489_s15, 1024  ;;  %p491_p12 = scmp.lt.s32.totalorder %s713_s3, %s489_s15 }
  0x53   : > { %p486_p7 = pnand %p485_p9, %p391_p6  ;;  %p492_p13 = scmp.lt.s32.totalorder %s490_s12, %s484_s5 }
  0x55   : > { %p487_p10 = pneg %p486_p7  ;;  %p493_p1 = por %p492_p13, %p491_p12 }
  0x57   : > { %p494_p2 = pnand %p493_p1, %p487_p10 }
  0x59   : > { %497 = shalt.err (!%p494_p2)
}
  0x5a   : > { %s498_s28 = scalar_lea.hbm %s711_s21, %s701_s24  ;;  %s502_s8 = scalar_lea.hbm %s764_s2, 1792 }
  0x5b   : > { %p499_p3 = scmp.ne.s32.totalorder %s711_s21, %s498_s28  ;;  %p503_p0 = scmp.lt.s32.totalorder %s711_s21, %s764_s2 }
  0x5c   : > { %p504_p8 = scmp.lt.s32.totalorder %s502_s8, %s498_s28 }
  0x5d   : > { %p500_p4 = pnand %p499_p3, %p391_p6 }
  0x5e   : > { %p505_p9 = por %p504_p8, %p503_p0 }
  0x5f   : > { %p501_p5 = pneg %p500_p4 }
  0x61   : > { %p506_p7 = pnand %p505_p9, %p501_p5 }
  0x63   : > { %509 = shalt.err (!%p506_p7)
}
  0x64   : > { %s570_s19 = smov 128   ;;  %s571_s25 = smov 8  }
  0x65   : > { %281 = dma.vmem_to_hbm [thread:$0]  (%p391_p6), %s713_s3, %s701_s24, %s711_s21, %s255_s18, %s570_s19, %s570_s19, %s571_s25  }
  0x66 PF: > { %p405_p10 = scmp.ge.s32.totalorder %s564_s14, 2  ;;  %s290_s26 = sand.u32 1, %s544_s9  }
  0x67   : > { %s291_s27 = scalar_lea.sflag [#allocation4], %s290_s26 }
  0x68   : > { %p402_p12 = pnand %p405_p10, %p641_p11 }
  0x6a   : > { %p403_p13 = pneg %p402_p12 }
  0x6c   : > { %539 = dma.done.wait (%p403_p13), %s291_s27, 512  }
  0x6d   : > { %541 = vsyncadd (%p403_p13), %s291_s27, 4294966784  ;;  %s18_s14 = sadd.s32 1, %s564_s14   ;;  %s768_s9 = smov %s548_s10 }
  0x6e   : > { %p15_p1 = scmp.ge.s32.totalorder %s18_s14, 6   ;;  %s769_s10 = smov %s552_s11 }
  0x6f   : > { %s770_s11 = smov %s639_s22  ;;  %s771_s12 = smov %s560_s13 }
  0x70   : > { %s772_s13 = smov %s774_s17  ;;  %17 = sbr.rel (!%p15_p1) target bundleno = 6 (0x6), region = 76 }
  0x75   :  { %296 = vsyncpa [#allocation3], 1 }
  0x76   :  { %298 = vsyncpa [#allocation3 + $0x1], 1 }
  0x77   :  { %299 = vsyncpa [#allocation4], 1 }
  0x78   :  { %301 = vsyncpa [#allocation4 + $0x1], 1 }

</bundles_post_ra>
